<compile_context>
chip_gen: v6e
topology: v6e:2x2x1
jax: 0.10.0
libtpu: 0.0.40
codegen_flags: <defaults>
</compile_context>

<pallas_src>
import functools

import jax
import jax.numpy as jnp
from jax import lax
from jax.experimental import pallas as pl
from jax.experimental.pallas import tpu as pltpu

_MIB = 1024 * 1024


# ---------------------------------------------------------------------------
# Generation-aware VMEM budgeting.
# ---------------------------------------------------------------------------
def _vmem_capacity_bytes():
    try:
        cap = int(getattr(pltpu.get_tpu_info(), "vmem_capacity_bytes", 0) or 0)
        if cap > 0:
            return cap
    except Exception:
        pass
    try:
        kind = jax.devices()[0].device_kind.lower()
        if "v7" in kind:
            return 64 * _MIB
        return 128 * _MIB          # v4 / v5e / v5p / v6e
    except Exception:
        return 64 * _MIB           # conservative (v7x-sized) fallback


def _vmem_budget():
    cap = _vmem_capacity_bytes()
    # Leave max(16 MiB, 20%) for compiler scratch / temporaries the estimators
    # below do not see: ~48 MiB usable on v7x, ~102 MiB on v5e/v6e.
    return cap - max(16 * _MIB, cap // 5), cap


def _vmem_limit(est, cap):
    return int(min(cap - 4 * _MIB, max(32 * _MIB, est + 16 * _MIB)))


def _fused_vmem_estimate(C, HW, chunk, in_is, out_is, w_bufs=1):
    io = 2 * C * HW * (in_is + out_is)         # double-buffered x / out blocks
    wts = w_bufs * 2 * (C * C + C) * 4         # w1,b1,w2,b2 (single-buffered)
    rel = 4 * C * C * 4                        # relT + softmax temporaries
    interm = 4 * C * chunk * 4                 # per-chunk f32 result/transpose
    return io + wts + rel + interm + 2 * _MIB


def _tiled_vmem_estimate(C, thw, rel_is, in_is, out_is, x_bufs=3):
    rel = 2 * C * C * rel_is                   # double-buffered relation block
    io = x_bufs * C * thw * in_is + 2 * C * thw * out_is
    interm = 3 * C * thw * 4                   # f32 result (+ transposed copy)
    return io + rel + interm + 2 * _MIB


def _pick_chunk(HW):
    """HW chunk for the fused path: lane-aligned divisor of HW (or full HW)."""
    if HW <= 512:
        return HW
    for t in (512, 384, 256, 128):
        if HW % t == 0:
            return t
    return HW


def _pick_hw_tile(C, HW, rel_is, in_is, out_is, budget):
    """Largest multiple-of-128 HW tile whose tiled working set fits the budget.

    The tiled grid uses pl.cdiv(HW, thw): the tile does not need to divide HW
    (boundary blocks are partial), so no full-HW fallback tile is needed.
    """
    if HW < 128:
        return HW
    hw_pad = -(-HW // 128) * 128
    best = 128
    t = 128
    while t <= min(hw_pad, 2048):
        if _tiled_vmem_estimate(C, t, rel_is, in_is, out_is) <= budget:
            best = t
        t += 128
    return min(best, hw_pad)


# ---------------------------------------------------------------------------
# Fused kernel: one batch element per grid step; feats read from HBM once.
# ---------------------------------------------------------------------------
def _cr_fused_kernel(x_ref, w1_ref, b1_ref, w2_ref, b2_ref, out_ref, *,
                     chunk, n_chunks, out_transposed, mm_dtype, exact_recip):
    # x_ref: (1, C, HW); w1/w2: (C, C); b1/b2: (C, 1)
    # out_ref: (1, HW, C) if out_transposed else (1, C, HW)
    x = x_ref[0]                                             # (C, HW), input dtype
    C, HW = x.shape
    f32 = jnp.float32

    # Global average pool, accumulated in f32 over HW chunks (never holds a
    # full f32 copy of the (C, HW) tile).
    if n_chunks == 1:
        ssum = jnp.sum(x, axis=1, keepdims=True, dtype=f32)
    else:
        def gap_body(i, acc):
            off = pl.multiple_of(i * chunk, chunk)
            xs = x[:, pl.ds(off, chunk)]
            return acc + jnp.sum(xs, axis=1, keepdims=True, dtype=f32)
        ssum = lax.fori_loop(0, n_chunks, gap_body, jnp.zeros((C, 1), f32))
    d = ssum * (1.0 / HW)                                    # (C, 1) f32

    # 1x1 convs on the (C,1,1) descriptor == dense matvecs (f32 accumulation).
    us = jnp.dot(w1_ref[...].astype(f32), d,
                 preferred_element_type=f32) + b1_ref[...].astype(f32)   # (C, 1)
    vs = jnp.dot(w2_ref[...].astype(f32), d,
                 preferred_element_type=f32) + b2_ref[...].astype(f32)   # (C, 1)

    # relations[i, j] = us[i] * vs[j], softmax over i (torch dim=1).  Build the
    # transposed orientation relT[j, i] directly: the softmax reduction stays
    # on the lane axis and the big matmul below needs NO operand transpose.
    relT = vs * jnp.transpose(us)                            # (C, C) f32
    relT = relT - jnp.max(relT, axis=1, keepdims=True)
    e = jnp.exp(relT)
    s = jnp.sum(e, axis=1, keepdims=True)
    if exact_recip:
        relT = e / s
    else:
        relT = e * pl.reciprocal(s, approx=True)             # EUP slot (~1e-3 rel err)
    relT = relT.astype(mm_dtype)
    x = x.astype(mm_dtype)

    # aug^T chunk = relT @ x_chunk (plain MXU dot, standard orientation).
    # Chunked over HW to cap the live f32 result (v7x VMEM).  When the output
    # is emitted lane-dense as (HW, C), only the small (C, chunk) f32 *result*
    # tile is transposed (XLU) before the store -- it hides under the
    # HBM-bound DMA and saves a full output-sized HBM round trip.
    def mm_chunk(off):
        xs = x[:, pl.ds(off, chunk)]
        y = jnp.dot(relT, xs, preferred_element_type=f32)    # (C, chunk) f32
        if out_transposed:
            out_ref[0, pl.ds(off, chunk), :] = jnp.transpose(y).astype(out_ref.dtype)
        else:
            out_ref[0, :, pl.ds(off, chunk)] = y.astype(out_ref.dtype)

    if n_chunks == 1:
        mm_chunk(0)
    else:
        def mm_body(i, carry):
            mm_chunk(pl.multiple_of(i * chunk, chunk))
            return carry
        lax.fori_loop(0, n_chunks, mm_body, 0)


# ---------------------------------------------------------------------------
# Tiled kernel: relations precomputed outside; per-tile matmul over (B, HW/thw).
# ---------------------------------------------------------------------------
def _cr_tiled_kernel(relT_ref, x_ref, out_ref, *, out_transposed):
    # relT_ref: (1, C, C) already in the orientation the matmul consumes.
    # x_ref:    (1, C, thw)
    # out_ref:  (1, thw, C) if out_transposed else (1, C, thw)
    relT = relT_ref[0]
    x = x_ref[0].astype(relT.dtype)
    y = jnp.dot(relT, x, preferred_element_type=jnp.float32)   # (C, thw) f32
    if out_transposed:
        # Transpose of the f32 *result* tile only (never of relations per step
        # and never of the streamed x tile); hides under the mem-bound DMA and
        # keeps the HBM output write lane-dense (no wrapper transpose pass).
        out_ref[0] = jnp.transpose(y).astype(out_ref.dtype)
    else:
        out_ref[0] = y.astype(out_ref.dtype)


# ---------------------------------------------------------------------------
# Runners.
# ---------------------------------------------------------------------------
def _run_fused(xf, w1, b1, w2, b2, *, out_dtype, out_transposed, mm_dtype,
               exact_recip, cap):
    B, C, HW = xf.shape
    in_is = jnp.dtype(xf.dtype).itemsize
    out_is = jnp.dtype(out_dtype).itemsize
    chunk = _pick_chunk(HW)
    n_chunks = HW // chunk
    est = _fused_vmem_estimate(C, HW, chunk, in_is, out_is, w_bufs=1)

    if out_transposed:
        out_shape = jax.ShapeDtypeStruct((B, HW, C), out_dtype)
        out_spec = pl.BlockSpec((1, HW, C), lambda b: (b, 0, 0))
    else:
        out_shape = jax.ShapeDtypeStruct((B, C, HW), out_dtype)
        out_spec = pl.BlockSpec((1, C, HW), lambda b: (b, 0, 0))

    # Constant-index weight/bias blocks: single-buffered -- frees ~2*(C^2+C)*4
    # bytes of double-buffer VMEM (matters most under v7x's 64 MiB).
    w_spec = pl.BlockSpec((C, C), lambda b: (0, 0), pipeline_mode=pl.Buffered(1))
    bias_spec = pl.BlockSpec((C, 1), lambda b: (0, 0), pipeline_mode=pl.Buffered(1))

    kernel = functools.partial(
        _cr_fused_kernel, chunk=chunk, n_chunks=n_chunks,
        out_transposed=out_transposed, mm_dtype=mm_dtype, exact_recip=exact_recip)

    return pl.pallas_call(
        kernel,
        out_shape=out_shape,
        grid_spec=pltpu.PrefetchScalarGridSpec(
            num_scalar_prefetch=0,
            grid=(B,),
            in_specs=[
                pl.BlockSpec((1, C, HW), lambda b: (b, 0, 0)),
                w_spec, bias_spec, w_spec, bias_spec,
            ],
            out_specs=out_spec,
        ),
        compiler_params=pltpu.CompilerParams(
            dimension_semantics=("parallel",),
            vmem_limit_bytes=_vmem_limit(est, cap),
        ),
    )(xf, w1, b1, w2, b2)


def _run_tiled(xf, w1, b1, w2, b2, *, out_dtype, out_transposed, mm_dtype,
               thw, budget, cap, vanilla=False):
    B, C, HW = xf.shape
    f32 = jnp.float32
    in_is = jnp.dtype(xf.dtype).itemsize
    out_is = jnp.dtype(out_dtype).itemsize

    # Relations are tiny (B, C, C): GAP + 1x1 convs + softmax in plain JAX
    # (costs one extra HBM read of feats for the GAP).  relT is produced in
    # the exact orientation the kernel's matmul consumes -- the kernel never
    # transposes it (review: no per-grid-step CxC XLU transpose).
    d = jnp.mean(xf, axis=2, dtype=f32)                              # (B, C)
    us = d @ w1.astype(f32).T + b1.astype(f32)[:, 0]                 # (B, C)
    vs = d @ w2.astype(f32).T + b2.astype(f32)[:, 0]                 # (B, C)
    relT = vs[:, :, None] * us[:, None, :]                           # relT[b, j, i]
    relT = jax.nn.softmax(relT, axis=2).astype(mm_dtype)

    rel_is = jnp.dtype(relT.dtype).itemsize
    if thw is None:
        thw = _pick_hw_tile(C, HW, rel_is, in_is, out_is, budget)
    n_t = pl.cdiv(HW, thw)
    est = _tiled_vmem_estimate(C, thw, rel_is, in_is, out_is)

    if vanilla:
        out_transposed = False

    x_spec = pl.BlockSpec((1, C, thw), lambda b, t: (b, 0, t))
    if (not vanilla) and cap <= 64 * _MIB and C * thw * in_is <= 2 * _MIB:
        # Small per-step tiles on v7x: triple-buffer the streamed x blocks so
        # the DMA is not exposed (high per-TC HBM BW, small per-step compute).
        x_spec = pl.BlockSpec((1, C, thw), lambda b, t: (b, 0, t),
                              pipeline_mode=pl.Buffered(3))

    if out_transposed:
        out_shape = jax.ShapeDtypeStruct((B, HW, C), out_dtype)
        out_spec = pl.BlockSpec((1, thw, C), lambda b, t: (b, t, 0))
    else:
        out_shape = jax.ShapeDtypeStruct((B, C, HW), out_dtype)
        out_spec = pl.BlockSpec((1, C, thw), lambda b, t: (b, 0, t))

    kernel = functools.partial(_cr_tiled_kernel, out_transposed=out_transposed)
    out = pl.pallas_call(
        kernel,
        out_shape=out_shape,
        grid_spec=pltpu.PrefetchScalarGridSpec(
            num_scalar_prefetch=0,
            grid=(B, n_t),
            in_specs=[
                pl.BlockSpec((1, C, C), lambda b, t: (b, 0, 0)),
                x_spec,
            ],
            out_specs=out_spec,
        ),
        compiler_params=pltpu.CompilerParams(
            # Both axes data-parallel: keeps both v7x TensorCores busy even at
            # B == 1 (no-op on single-TC v5e/v6e).
            dimension_semantics=("parallel", "parallel"),
            vmem_limit_bytes=_vmem_limit(est, cap),
        ),
    )(relT, xf)
    return out, out_transposed


# ---------------------------------------------------------------------------
# Public wrapper.
# ---------------------------------------------------------------------------
def cr_module(feats, w1, b1, w2, b2, *, hw_tile=None, matmul_dtype=None,
              exact_softmax_recip=False):
    """CR_Module forward.

    feats: (B, C, H, W) NCHW; w1/w2: (C, C); b1/b2: (C, 1).
    hw_tile: force the tiled path with this HW tile (multiple of 128).
    matmul_dtype: optional narrower MXU operand dtype (e.g. jnp.bfloat16) for
      the relation matmul (f32 accumulation kept); gate behind accuracy needs.
    exact_softmax_recip: exact divide for the softmax denominator instead of
      the EUP approximate reciprocal (~1e-3 relative error).
    """
    B, C, H, W = feats.shape
    HW = H * W
    out_dtype = feats.dtype
    mm_dtype = jnp.dtype(matmul_dtype) if matmul_dtype is not None \
        else jnp.dtype(feats.dtype)
    in_is = jnp.dtype(feats.dtype).itemsize
    out_is = jnp.dtype(out_dtype).itemsize

    budget, cap = _vmem_budget()

    # NCHW -> (B, C, HW): free bitcast; lane-dense last dim inside the kernel
    # (unmasked vld/vst, no in-kernel relayout copy).
    xf = feats.reshape(B, C, HW)

    # The torch .view(B, C, H, W) at the end is a flat reinterpretation of aug
    # (B, HW, C), so emitting the kernel output directly in (B, HW, C) layout
    # is the zero-copy final layout.  Only do it when C gives a reasonably
    # dense lane dim; below that, (B, C, HW) + one XLA transpose wins.
    out_transposed = (C >= 128) and (C % 8 == 0)

    chunk = _pick_chunk(HW)
    fused_est = _fused_vmem_estimate(C, HW, chunk, in_is, out_is, w_bufs=1)
    # B == 1 leaves the fused (B,)-grid with zero pipelining and only one of
    # v7x's two TensorCores busy; the two-pass tiled path wins there.
    use_fused = (hw_tile is None) and (B >= 2) and (fused_est <= budget)

    out = None
    is_transposed = out_transposed
    if use_fused:
        try:
            out = _run_fused(xf, w1, b1, w2, b2, out_dtype=out_dtype,
                             out_transposed=out_transposed, mm_dtype=mm_dtype,
                             exact_recip=exact_softmax_recip, cap=cap)
        except Exception:
            out = None                     # fall through to the tiled path
    if out is None:
        try:
            out, is_transposed = _run_tiled(
                xf, w1, b1, w2, b2, out_dtype=out_dtype,
                out_transposed=out_transposed, mm_dtype=mm_dtype,
                thw=hw_tile, budget=budget, cap=cap)
        except Exception:
            # Vanilla safety net: no pipeline_mode, no in-kernel transposes.
            out, is_transposed = _run_tiled(
                xf, w1, b1, w2, b2, out_dtype=out_dtype,
                out_transposed=False, mm_dtype=mm_dtype,
                thw=hw_tile, budget=budget, cap=cap, vanilla=True)

    if is_transposed:
        # out is aug (B, HW, C); the torch .view(B, C, H, W) is a flat-order
        # reinterpret, which reshape reproduces exactly (zero extra HBM traffic).
        return out.reshape(B, C, H, W)
    # out is aug^T (B, C, HW): one XLA transpose recovers aug's flat order.
    return out.transpose(0, 2, 1).reshape(B, C, H, W)


# ---------------------------------------------------------------------------
# Pure-JAX reference mirroring the PyTorch forward exactly.
# ---------------------------------------------------------------------------
def ref_cr_module(feats, w1, b1, w2, b2):
    B, C, H, W = feats.shape
    f32 = jnp.float32
    d = jnp.mean(feats.astype(f32), axis=(2, 3))                   # GAP -> (B, C)
    us = d @ w1.astype(f32).T + b1.astype(f32)[:, 0]               # (B, C)
    vs = d @ w2.astype(f32).T + b2.astype(f32)[:, 0]               # (B, C)
    rel = us[:, :, None] * vs[:, None, :]                          # (B, C, C)
    rel = jax.nn.softmax(rel, axis=1)                              # softmax over i
    fp = feats.astype(f32).reshape(B, C, H * W).transpose(0, 2, 1) # (B, HW, C)
    aug = jnp.einsum("bki,bij->bkj", fp, rel)                      # (B, HW, C)
    return aug.reshape(B, C, H, W).astype(feats.dtype)             # torch .view() quirk


if __name__ == "__main__":
    key = jax.random.PRNGKey(0)

    def make_inputs(k, B, C, H, W, dtype=jnp.float32):
        k1, k2, k3, k4, k5 = jax.random.split(k, 5)
        feats = jax.random.normal(k1, (B, C, H, W), dtype=dtype)
        bound = 1.0 / (C ** 0.5)   # PyTorch-style Conv2d(1x1) init bound
        w1 = jax.random.uniform(k2, (C, C), minval=-bound, maxval=bound, dtype=jnp.float32)
        b1 = jax.random.uniform(k3, (C, 1), minval=-bound, maxval=bound, dtype=jnp.float32)
        w2 = jax.random.uniform(k4, (C, C), minval=-bound, maxval=bound, dtype=jnp.float32)
        b2 = jax.random.uniform(k5, (C, 1), minval=-bound, maxval=bound, dtype=jnp.float32)
        return feats, w1, b1, w2, b2

    def check(name, out, ref, atol=2e-3, rtol=2e-3):
        assert out.shape == ref.shape, (name, out.shape, ref.shape)
        assert jnp.allclose(out, ref, atol=atol, rtol=rtol), f"{name}: mismatch vs reference"

    keys = jax.random.split(key, 4)

    # Small C (< 128): lane-dense (B, C, HW) kernel output + wrapper transpose.
    a = make_inputs(keys[0], 2, 4, 16, 16)
    ra = ref_cr_module(*a)
    check("fused C=4", jax.block_until_ready(cr_module(*a)), ra)
    check("tiled C=4", jax.block_until_ready(cr_module(*a, hw_tile=128)), ra)

    # C = 128: kernel emits aug directly in the lane-dense (B, HW, C) layout.
    b = make_inputs(keys[1], 2, 128, 16, 16)
    rb = ref_cr_module(*b)
    check("fused C=128", jax.block_until_ready(cr_module(*b)), rb)
    check("tiled C=128", jax.block_until_ready(cr_module(*b, hw_tile=128)), rb)

    # Larger HW: exercises the in-kernel HW chunking of the fused matmul/GAP.
    c = make_inputs(keys[2], 2, 128, 32, 32)
    rc = ref_cr_module(*c)
    check("fused chunked C=128 HW=1024", jax.block_until_ready(cr_module(*c)), rc)

    # B == 1: auto-selects the tiled path (fused grid would not pipeline and
    # would use only one v7x TensorCore).
    d = make_inputs(keys[3], 1, 128, 16, 16)
    rd = ref_cr_module(*d)
    check("tiled B=1 C=128", jax.block_until_ready(cr_module(*d)), rd)

    print("KERNEL_OK")
</pallas_src>

<mosaic_0001>
module attributes {stable_mosaic.version = 11 : i64} {
  func.func @_cr_tiled_kernel(%arg0: i32, %arg1: i32, %arg2: memref<1x4x4xf32, #tpu.memory_space<vmem>>, %arg3: memref<1x4x256xf32, #tpu.memory_space<vmem>>, %arg4: memref<1x4x256xf32, #tpu.memory_space<vmem>>) attributes {dimension_semantics = [#tpu.dimension_semantics<parallel>, #tpu.dimension_semantics<parallel>], iteration_bounds = array<i64: 2, 1>, scalar_prefetch = 0 : i64, scratch_operands = 0 : i64, tpu.core_type = #tpu.core_type<tc>, window_params = [{transform_indices = @transform_0, window_bounds = array<i64: 1, 4, 4>}, {transform_indices = @transform_1, window_bounds = array<i64: 1, 4, 256>}, {transform_indices = @transform_2, window_bounds = array<i64: 1, 4, 256>}]} {
    %c0 = arith.constant 0 : index
    %c0_0 = arith.constant 0 : index
    %c0_1 = arith.constant 0 : index
    %0 = vector.load %arg2[%c0, %c0_0, %c0_1] : memref<1x4x4xf32, #tpu.memory_space<vmem>>, vector<1x4x4xf32>
    %1 = vector.shape_cast %0 : vector<1x4x4xf32> to vector<4x4xf32>
    %c0_2 = arith.constant 0 : index
    %c0_3 = arith.constant 0 : index
    %c0_4 = arith.constant 0 : index
    %2 = vector.load %arg3[%c0_2, %c0_3, %c0_4] : memref<1x4x256xf32, #tpu.memory_space<vmem>>, vector<1x4x256xf32>
    %3 = vector.shape_cast %2 : vector<1x4x256xf32> to vector<4x256xf32>
    %cst = arith.constant dense<0.000000e+00> : vector<4x256xf32>
    %4 = tpu.matmul %1, %3, %cst {dimension_numbers = #tpu.dot_dimension_numbers<[1], [0], [0], [1], [0, 0, 1, 1], [], []>} : vector<4x4xf32>, vector<4x256xf32>, vector<4x256xf32> -> vector<4x256xf32>
    %c0_5 = arith.constant 0 : index
    %c0_6 = arith.constant 0 : index
    %c0_7 = arith.constant 0 : index
    %5 = vector.load %arg4[%c0_5, %c0_6, %c0_7] : memref<1x4x256xf32, #tpu.memory_space<vmem>>, vector<1x4x256xf32>
    %6 = vector.shape_cast %5 : vector<1x4x256xf32> to vector<4x256xf32>
    %7 = vector.shape_cast %4 : vector<4x256xf32> to vector<1x4x256xf32>
    tpu.vector_store %arg4[%c0_5, %c0_6, %c0_7], %7 {strides = array<i32>} : memref<1x4x256xf32, #tpu.memory_space<vmem>>, vector<1x4x256xf32>,
    return
  }
  func.func @transform_0(%arg0: i32, %arg1: i32) -> (i32, i32, i32) {
    %c0_i32 = arith.constant 0 : i32
    %c0_i32_0 = arith.constant 0 : i32
    %c0_i32_1 = arith.constant 0 : i32
    return %arg0, %c0_i32, %c0_i32_0 : i32, i32, i32
  }
  func.func @transform_1(%arg0: i32, %arg1: i32) -> (i32, i32, i32) {
    %c0_i32 = arith.constant 0 : i32
    %c0_i32_0 = arith.constant 0 : i32
    return %arg0, %c0_i32, %arg1 : i32, i32, i32
  }
  func.func @transform_2(%arg0: i32, %arg1: i32) -> (i32, i32, i32) {
    %c0_i32 = arith.constant 0 : i32
    %c0_i32_0 = arith.constant 0 : i32
    return %arg0, %c0_i32, %arg1 : i32, i32, i32
  }
}

module attributes {stable_mosaic.version = 11 : i64} {
  func.func @_cr_tiled_kernel(%arg0: i32, %arg1: i32, %arg2: memref<1x4x4xf32, #tpu.memory_space<vmem>>, %arg3: memref<1x4x256xf32, #tpu.memory_space<vmem>>, %arg4: memref<1x4x256xf32, #tpu.memory_space<vmem>>) attributes {dimension_semantics = [#tpu.dimension_semantics<parallel>, #tpu.dimension_semantics<parallel>], iteration_bounds = array<i64: 2, 1>, scalar_prefetch = 0 : i64, scratch_operands = 0 : i64, tpu.core_type = #tpu.core_type<tc>, window_params = [{transform_indices = @transform_0, window_bounds = array<i64: 1, 4, 4>}, {transform_indices = @transform_1, window_bounds = array<i64: 1, 4, 256>}, {transform_indices = @transform_2, window_bounds = array<i64: 1, 4, 256>}]} {
    %c0 = arith.constant 0 : index
    %c0_0 = arith.constant 0 : index
    %c0_1 = arith.constant 0 : index
    %0 = vector.load %arg2[%c0, %c0_0, %c0_1] : memref<1x4x4xf32, #tpu.memory_space<vmem>>, vector<1x4x4xf32>
    %1 = vector.shape_cast %0 : vector<1x4x4xf32> to vector<4x4xf32>
    %c0_2 = arith.constant 0 : index
    %c0_3 = arith.constant 0 : index
    %c0_4 = arith.constant 0 : index
    %2 = vector.load %arg3[%c0_2, %c0_3, %c0_4] : memref<1x4x256xf32, #tpu.memory_space<vmem>>, vector<1x4x256xf32>
    %3 = vector.shape_cast %2 : vector<1x4x256xf32> to vector<4x256xf32>
    %cst = arith.constant dense<0.000000e+00> : vector<4x256xf32>
    %4 = tpu.matmul %1, %3, %cst {dimension_numbers = #tpu.dot_dimension_numbers<[1], [0], [0], [1], [0, 0, 1, 1], [], []>} : vector<4x4xf32>, vector<4x256xf32>, vector<4x256xf32> -> vector<4x256xf32>
    %c0_5 = arith.constant 0 : index
    %c0_6 = arith.constant 0 : index
    %c0_7 = arith.constant 0 : index
    %5 = vector.load %arg4[%c0_5, %c0_6, %c0_7] : memref<1x4x256xf32, #tpu.memory_space<vmem>>, vector<1x4x256xf32>
    %6 = vector.shape_cast %5 : vector<1x4x256xf32> to vector<4x256xf32>
    %7 = vector.shape_cast %4 : vector<4x256xf32> to vector<1x4x256xf32>
    tpu.vector_store %arg4[%c0_5, %c0_6, %c0_7], %7 {strides = array<i32>} : memref<1x4x256xf32, #tpu.memory_space<vmem>>, vector<1x4x256xf32>,
    return
  }
  func.func @transform_0(%arg0: i32, %arg1: i32) -> (i32, i32, i32) {
    %c0_i32 = arith.constant 0 : i32
    %c0_i32_0 = arith.constant 0 : i32
    %c0_i32_1 = arith.constant 0 : i32
    return %arg0, %c0_i32, %c0_i32_0 : i32, i32, i32
  }
  func.func @transform_1(%arg0: i32, %arg1: i32) -> (i32, i32, i32) {
    %c0_i32 = arith.constant 0 : i32
    %c0_i32_0 = arith.constant 0 : i32
    return %arg0, %c0_i32, %arg1 : i32, i32, i32
  }
  func.func @transform_2(%arg0: i32, %arg1: i32) -> (i32, i32, i32) {
    %c0_i32 = arith.constant 0 : i32
    %c0_i32_0 = arith.constant 0 : i32
    return %arg0, %c0_i32, %arg1 : i32, i32, i32
  }
}

</mosaic_0001>

<bundles_post_ra>
// kernel: tpu_custom_call.1
= control target key start
LH: loop header
LB: loop body
LE: loop exit
PB: predicated region body
PF: predicated region fallthrough
CT: control target
= control target key end

     0   :  { %7 = vsyncpa [#allocation3], 0  ;;  %s847_s0 = inlined_call_operand.hbm [shape: f32[2,4,4], index: 0, kind: input, shape index: {}]   ;;  %s848_s1 = inlined_call_operand.hbm [shape: f32[2,4,256], index: 1, kind: input, shape index: {}]   ;;  %s849_s2 = inlined_call_operand.hbm [shape: f32[2,4,256], index: 2, kind: output, shape index: {}]  }
   0x1   :  { %9 = vsyncpa [#allocation3 + $0x1], 0 }
   0x2   :  { %10 = vsyncpa [#allocation6], 0 }
   0x3   :  { %12 = vsyncpa [#allocation6 + $0x1], 0 }
   0x4   :  { %13 = vsyncpa [#allocation4], 0 }
   0x5   :  { %15 = vsyncpa [#allocation4 + $0x1], 0  ;;  %s683_s9 = smov 0   ;;  %s685_s10 = smov 0  }
   0x6   :  { %s687_s11 = smov 0   ;;  %s689_s12 = smov 0  }
   0x7   :  { %s691_s13 = smov 0   ;;  %s693_s14 = smov 0  }
   0x8 LB: > { %s430_s15 = sadd.s32 4294967295, %s662_s14   ;;  %s431_s16 = sadd.s32 4294967294, %s662_s14   ;;  %s662_s14 = sphi %s693_s14, %s21_s14   ;;  %s658_s13 = sphi %s691_s13, %s861_s13   ;;  %s654_s12 = sphi %s689_s12, %s860_s12   ;;  %s650_s11 = sphi %s687_s11, %s859_s11   ;;  %s646_s10 = sphi %s685_s10, %s858_s10   ;;  %s642_s9 = sphi %s683_s9, %s857_s9  }
   0x9   : > { %s33_s17 = sadd.s32 1, %s658_s13  ;;  %s40_s18 = sadd.s32 1, %s650_s11 }
   0xa   : > { %p35_p0 = scmp.ge.s32.totalorder %s33_s17, 2  ;;  %p47_p1 = scmp.ne.s32.totalorder %s650_s11, %s646_s10 }
   0xb   : > { %p48_p2 = scmp.eq.s32.totalorder %s662_s14, 0  ;;  %p53_p3 = scmp.ne.s32.totalorder %s646_s10, %s642_s9 }
   0xc   : > { %s863_s17 = smov (%p35_p0, %s33_s17), 0  ;;  %p54_p5 = scmp.eq.s32.totalorder %s430_s15, 0 }
   0xd   : > { %p724_p4 = por %p48_p2, %p47_p1  ;;  %s37_s20 = ssub.s32 %s658_s13, %s863_s17 }
   0xe   : > { %p107_p6 = scmp.eq.s32.totalorder %s430_s15, 1  ;;  %p38_p7 = scmp.eq.s32.totalorder %s37_s20, 0 }
   0xf   : > { %p730_p8 = por %p54_p5, %p53_p3  ;;  %p113_p10 = scmp.eq.s32.totalorder %s431_s16, 1 }
  0x10   : > { %p734_p9 = por %p107_p6, %p47_p1  ;;  %p470_p13 = scmp.lt.s32.totalorder %s662_s14, 2 }
  0x11   : > { %s739_s23 = scalar_select %p38_p7, %s650_s11, %s40_s18  }
  0x12   : > { %p741_p11 = por %p113_p10, %p53_p3  ;;  %s748_s25 = sand.u32 1, %s650_s11  }
  0x13   : > { %s434_s26 = sshll.u32 %s748_s25, 2  ;;  %s435_s27 = sshll.u32 %s658_s13, 6 }
  0x14   : > { %s142_s30 = scalar_lea.hbm %s847_s0, %s435_s27  ;;  %s137_s3 = scalar_lea.vmem [#allocation2], %s434_s26 }
  0x15   : > { %s144_s4 = sshll.u32 %s137_s3, 4  ;;  %p757_p0 = pnand %p470_p13, %p724_p4  ;;  %s145_s4 = int_to_ptr.vmem [resolvable:$true] %s144_s4 }
  0x16   : > { %p439_p1 = scmp.ge.s32.totalorder %s662_s14, 1  ;;  %p170_p2 = scmp.lt.s32.totalorder %s662_s14, 3 }
  0x17   : > { %s134_s6 = scalar_lea.sflag [#allocation3], %s748_s25  ;;  %p524_p3 = pneg %p757_p0 }
  0x18   : > { %s535_s7 = scalar_lea.vmem %s145_s4, 64  ;;  %s664_s8 = smov [#allocation2]  }
  0x19   : > { %p536_p5 = scmp.ne.s32.totalorder %s145_s4, %s535_s7  ;;  %s540_s15 = sshll.u32 %s664_s8, 4  ;;  %s541_s15 = int_to_ptr.vmem [resolvable:$false] %s540_s15 }
  0x1a   : > { %s542_s16 = scalar_lea.vmem %s541_s15, 128  ;;  %p543_p4 = scmp.lt.s32.totalorder %s145_s4, %s541_s15 }
  0x1b   : > { %p538_p6 = pnand %p536_p5, %p524_p3  ;;  %p544_p10 = scmp.lt.s32.totalorder %s542_s16, %s535_s7 }
  0x1d   : > { %p539_p7 = pneg %p538_p6  ;;  %p545_p13 = por %p544_p10, %p543_p4 }
  0x1f   : > { %p546_p12 = pnand %p545_p13, %p539_p7 }
  0x21   : > { %549 = shalt.err (!%p546_p12)
}
  0x22   : > { %462 = dma.hbm_to_vmem [thread:$0]  (!%p757_p0), %s142_s30, 64, %s145_s4, %s134_s6  }
  0x23   : > { %p775_p5 = pnand %p439_p1, %p170_p2  ;;  %s436_s19 = sshll.u32 %s748_s25, 3 }
  0x24   : > { %s451_s20 = sshll.u32 %s658_s13, 7  ;;  %s155_s29 = scalar_lea.vmem [#allocation5], %s436_s19 }
  0x25   : > { %s163_s28 = scalar_lea.hbm %s848_s1, %s451_s20  ;;  %s165_s3 = sshll.u32 %s155_s29, 4  ;;  %s166_s3 = int_to_ptr.vmem [resolvable:$true] %s165_s3 }
  0x26   : > { %s152_s7 = scalar_lea.sflag [#allocation6], %s748_s25  ;;  %s563_s8 = scalar_lea.vmem %s166_s3, 128 }
  0x27   : > { %p564_p12 = scmp.ne.s32.totalorder %s166_s3, %s563_s8  ;;  %s665_s30 = smov [#allocation5]  }
  0x28   : > { %s568_s4 = sshll.u32 %s665_s30, 4  ;;  %s569_s4 = int_to_ptr.vmem [resolvable:$false] %s568_s4 }
  0x29   : > { %p566_p6 = pnand %p564_p12, %p524_p3  ;;  %s570_s6 = scalar_lea.vmem %s569_s4, 256 }
  0x2a   : > { %p571_p1 = scmp.lt.s32.totalorder %s166_s3, %s569_s4  ;;  %p572_p2 = scmp.lt.s32.totalorder %s570_s6, %s563_s8 }
  0x2b   : > { %p567_p7 = pneg %p566_p6 }
  0x2c   : > { %p573_p4 = por %p572_p2, %p571_p1 }
  0x2e   : > { %p574_p10 = pnand %p573_p4, %p567_p7 }
  0x30   : > { %577 = shalt.err (!%p574_p10)
}
  0x31   : > { %465 = dma.hbm_to_vmem [thread:$0]  (!%p757_p0), %s163_s28, 128, %s166_s3, %s152_s7  }
  0x32   : > { %174 = sbr.rel (%p775_p5) target bundleno = 274 (0x112), region = 28  ;;  %s793_s25 = sand.u32 (!%p775_p5), 1, %s646_s10  }
  0x33   : > { %s440_s15 = sshll.u32 (!%p775_p5), %s793_s25, 2  ;;  %s177_s16 = scalar_lea.sflag (!%p775_p5), [#allocation3], %s793_s25 }
  0x34   : > { %s180_s19 = scalar_lea.vmem (!%p775_p5), [#allocation2], %s440_s15 }
  0x37   : > { %629 = dma.done.wait (%p730_p8), %s177_s16, 64  }
  0x38   : > { %631 = vsyncadd (%p730_p8), %s177_s16, 4294967232  ;;  %s441_s5 = sshll.u32 %s793_s25, 3  ;;  %s186_s18 = scalar_lea.sflag [#allocation6], %s793_s25 }
  0x39   : > { %s189_s20 = scalar_lea.vmem [#allocation5], %s441_s5 }
  0x3a   : > { %633 = dma.done.wait (%p730_p8), %s186_s18, 128  }
  0x3b   : > { %635 = vsyncadd (%p730_p8), %s186_s18, 4294967168  ;;  %v666_v0 = vmov 0.0   ;;  %v218_v1 = vld [vmem:[%s189_s20] sm:$0xff]  ;;  %vm225_vm0 = vcmask 1043456   ;;  %v217_v3 = vld [vmem:[%s180_s19] sm:$0xf] }
  0x3c   : > { %294 = vmatprep.mubr.f32.mxu0 %v666_v0  ;;  %v220_v2 = vcombine.high %v218_v1, %v218_v1  ;;  %vm221_vm1 = vcmask 31744   ;;  %s452_s26 = sshll.u32 %s654_s12, 7  ;;  %s214_s27 = scalar_lea.vmem [#allocation7], %s441_s5 }
  0x3d   : > { %s323_s28 = sshll.u32 %s214_s27, 4  ;;  %s321_s3 = scalar_lea.hbm %s849_s2, %s452_s26  ;;  %s324_s28 = int_to_ptr.vmem [resolvable:$true] %s323_s28 }
  0x3e   : > { %443 = vmatprep.subr.msk.mxu0 %vm225_vm0, %v220_v2  ;;  %s307_s7 = scalar_lea.sflag [#allocation4], %s793_s25  ;;  %s578_s8 = scalar_lea.vmem %s324_s28, 128 }
  0x3f   : > { %444 = vmatpush1.msk.msra.mxu0 %vm225_vm0, %v218_v1  ;;  %p579_p8 = scmp.ne.s32.totalorder %s324_s28, %s578_s8  ;;  %s667_s30 = smov [#allocation7]  }
  0x40   : > { %445 = vmatmul.mubr.msk.f32.vlgmr.msra.gmra.mxu0 %vm221_vm1, %v217_v3  ;;  %s582_s4 = sshll.u32 %s667_s30, 4  ;;  %s583_s4 = int_to_ptr.vmem [resolvable:$false] %s582_s4 }
  0x41   : > { %p580_p0 = pnand %p579_p8, %p734_p9  ;;  %s584_s12 = scalar_lea.vmem %s583_s4, 256 }
  0x42   : > { %p585_p13 = scmp.lt.s32.totalorder %s324_s28, %s583_s4  ;;  %p586_p5 = scmp.lt.s32.totalorder %s584_s12, %s578_s8 }
  0x43   : > { %p581_p3 = pneg %p580_p0 }
  0x44   : > { %p587_p12 = por %p586_p5, %p585_p13 }
  0x46   : > { %p588_p6 = pnand %p587_p12, %p581_p3 }
 0x100   : > { %v296_v4 = vpop.f32.mrf.mxu0 }
 0x102   : > { %v298_v5 = vpop.f32.mrf.mxu0 }
 0x103   : > { %v303_v6 = vcombine.low %v296_v4, %v298_v5 }
 0x105   : > { %305 = vst [vmem:[%s214_s27] sm:$0xff] %v303_v6 }
 0x106   : > { %591 = shalt.err (!%p588_p6)
}
 0x107   : > { %s592_s6 = scalar_lea.hbm %s321_s3, 128  ;;  %s596_s16 = scalar_lea.hbm %s849_s2, 256 }
 0x108   : > { %p593_p7 = scmp.ne.s32.totalorder %s321_s3, %s592_s6  ;;  %p597_p4 = scmp.lt.s32.totalorder %s321_s3, %s849_s2 }
 0x109   : > { %p598_p10 = scmp.lt.s32.totalorder %s596_s16, %s592_s6 }
 0x10a   : > { %p594_p1 = pnand %p593_p7, %p734_p9 }
 0x10b   : > { %p599_p8 = por %p598_p10, %p597_p4 }
 0x10c   : > { %p595_p2 = pneg %p594_p1 }
 0x10e   : > { %p600_p0 = pnand %p599_p8, %p595_p2 }
 0x110   : > { %603 = shalt.err (!%p600_p0)
}
 0x111   : > { %457 = dma.vmem_to_hbm [thread:$0]  (%p734_p9), %s324_s28, 128, %s321_s3, %s307_s7  }
 0x112 PF: > { %s335_s18 = sand.u32 1, %s642_s9   ;;  %p856_p3 = scmp.ge.s32.totalorder %s662_s14, 2 }
 0x113   : > { %s336_s20 = scalar_lea.sflag [#allocation4], %s335_s18 }
 0x114   : > { %p467_p13 = pnand %p856_p3, %p741_p11 }
 0x116   : > { %p468_p5 = pneg %p467_p13 }
 0x118   : > { %637 = dma.done.wait (%p468_p5), %s336_s20, 128  }
 0x119   : > { %639 = vsyncadd (%p468_p5), %s336_s20, 4294967168  ;;  %s21_s14 = sadd.s32 1, %s662_s14   ;;  %s857_s9 = smov %s646_s10 }
 0x11a   : > { %p18_p12 = scmp.ge.s32.totalorder %s21_s14, 4   ;;  %s858_s10 = smov %s650_s11 }
 0x11b   : > { %s859_s11 = smov %s739_s23  ;;  %s860_s12 = smov %s658_s13 }
 0x11c   : > { %s861_s13 = smov %s863_s17  ;;  %20 = sbr.rel (!%p18_p12) target bundleno = 8 (0x8), region = 86 }
 0x121   :  { %341 = vsyncpa [#allocation3], 1 }
 0x122   :  { %343 = vsyncpa [#allocation3 + $0x1], 1 }
 0x123   :  { %344 = vsyncpa [#allocation6], 1 }
 0x124   :  { %346 = vsyncpa [#allocation6 + $0x1], 1 }
 0x125   :  { %347 = vsyncpa [#allocation4], 1 }
 0x126   :  { %349 = vsyncpa [#allocation4 + $0x1], 1 }

// kernel: tpu_custom_call.1
= control target key start
LH: loop header
LB: loop body
LE: loop exit
PB: predicated region body
PF: predicated region fallthrough
CT: control target
= control target key end

     0   :  { %7 = vsyncpa [#allocation3], 0  ;;  %s847_s0 = inlined_call_operand.hbm [shape: f32[2,4,4], index: 0, kind: input, shape index: {}]   ;;  %s848_s1 = inlined_call_operand.hbm [shape: f32[2,4,256], index: 1, kind: input, shape index: {}]   ;;  %s849_s2 = inlined_call_operand.hbm [shape: f32[2,4,256], index: 2, kind: output, shape index: {}]  }
   0x1   :  { %9 = vsyncpa [#allocation3 + $0x1], 0 }
   0x2   :  { %10 = vsyncpa [#allocation6], 0 }
   0x3   :  { %12 = vsyncpa [#allocation6 + $0x1], 0 }
   0x4   :  { %13 = vsyncpa [#allocation4], 0 }
   0x5   :  { %15 = vsyncpa [#allocation4 + $0x1], 0  ;;  %s683_s9 = smov 0   ;;  %s685_s10 = smov 0  }
   0x6   :  { %s687_s11 = smov 0   ;;  %s689_s12 = smov 0  }
   0x7   :  { %s691_s13 = smov 0   ;;  %s693_s14 = smov 0  }
   0x8 LB: > { %s430_s15 = sadd.s32 4294967295, %s662_s14   ;;  %s431_s16 = sadd.s32 4294967294, %s662_s14   ;;  %s662_s14 = sphi %s693_s14, %s21_s14   ;;  %s658_s13 = sphi %s691_s13, %s861_s13   ;;  %s654_s12 = sphi %s689_s12, %s860_s12   ;;  %s650_s11 = sphi %s687_s11, %s859_s11   ;;  %s646_s10 = sphi %s685_s10, %s858_s10   ;;  %s642_s9 = sphi %s683_s9, %s857_s9  }
   0x9   : > { %s33_s17 = sadd.s32 1, %s658_s13  ;;  %s40_s18 = sadd.s32 1, %s650_s11 }
   0xa   : > { %p35_p0 = scmp.ge.s32.totalorder %s33_s17, 2  ;;  %p47_p1 = scmp.ne.s32.totalorder %s650_s11, %s646_s10 }
   0xb   : > { %p48_p2 = scmp.eq.s32.totalorder %s662_s14, 0  ;;  %p53_p3 = scmp.ne.s32.totalorder %s646_s10, %s642_s9 }
   0xc   : > { %s863_s17 = smov (%p35_p0, %s33_s17), 0  ;;  %p54_p5 = scmp.eq.s32.totalorder %s430_s15, 0 }
   0xd   : > { %p724_p4 = por %p48_p2, %p47_p1  ;;  %s37_s20 = ssub.s32 %s658_s13, %s863_s17 }
   0xe   : > { %p107_p6 = scmp.eq.s32.totalorder %s430_s15, 1  ;;  %p38_p7 = scmp.eq.s32.totalorder %s37_s20, 0 }
   0xf   : > { %p730_p8 = por %p54_p5, %p53_p3  ;;  %p113_p10 = scmp.eq.s32.totalorder %s431_s16, 1 }
  0x10   : > { %p734_p9 = por %p107_p6, %p47_p1  ;;  %p470_p13 = scmp.lt.s32.totalorder %s662_s14, 2 }
  0x11   : > { %s739_s23 = scalar_select %p38_p7, %s650_s11, %s40_s18  }
  0x12   : > { %p741_p11 = por %p113_p10, %p53_p3  ;;  %s748_s25 = sand.u32 1, %s650_s11  }
  0x13   : > { %s434_s26 = sshll.u32 %s748_s25, 2  ;;  %s435_s27 = sshll.u32 %s658_s13, 6 }
  0x14   : > { %s142_s30 = scalar_lea.hbm %s847_s0, %s435_s27  ;;  %s137_s3 = scalar_lea.vmem [#allocation2], %s434_s26 }
  0x15   : > { %s144_s4 = sshll.u32 %s137_s3, 4  ;;  %p757_p0 = pnand %p470_p13, %p724_p4  ;;  %s145_s4 = int_to_ptr.vmem [resolvable:$true] %s144_s4 }
  0x16   : > { %p439_p1 = scmp.ge.s32.totalorder %s662_s14, 1  ;;  %p170_p2 = scmp.lt.s32.totalorder %s662_s14, 3 }
  0x17   : > { %s134_s6 = scalar_lea.sflag [#allocation3], %s748_s25  ;;  %p524_p3 = pneg %p757_p0 }
  0x18   : > { %s535_s7 = scalar_lea.vmem %s145_s4, 64  ;;  %s664_s8 = smov [#allocation2]  }
  0x19   : > { %p536_p5 = scmp.ne.s32.totalorder %s145_s4, %s535_s7  ;;  %s540_s15 = sshll.u32 %s664_s8, 4  ;;  %s541_s15 = int_to_ptr.vmem [resolvable:$false] %s540_s15 }
  0x1a   : > { %s542_s16 = scalar_lea.vmem %s541_s15, 128  ;;  %p543_p4 = scmp.lt.s32.totalorder %s145_s4, %s541_s15 }
  0x1b   : > { %p538_p6 = pnand %p536_p5, %p524_p3  ;;  %p544_p10 = scmp.lt.s32.totalorder %s542_s16, %s535_s7 }
  0x1d   : > { %p539_p7 = pneg %p538_p6  ;;  %p545_p13 = por %p544_p10, %p543_p4 }
  0x1f   : > { %p546_p12 = pnand %p545_p13, %p539_p7 }
  0x21   : > { %549 = shalt.err (!%p546_p12)
}
  0x22   : > { %462 = dma.hbm_to_vmem [thread:$0]  (!%p757_p0), %s142_s30, 64, %s145_s4, %s134_s6  }
  0x23   : > { %p775_p5 = pnand %p439_p1, %p170_p2  ;;  %s436_s19 = sshll.u32 %s748_s25, 3 }
  0x24   : > { %s451_s20 = sshll.u32 %s658_s13, 7  ;;  %s155_s29 = scalar_lea.vmem [#allocation5], %s436_s19 }
  0x25   : > { %s163_s28 = scalar_lea.hbm %s848_s1, %s451_s20  ;;  %s165_s3 = sshll.u32 %s155_s29, 4  ;;  %s166_s3 = int_to_ptr.vmem [resolvable:$true] %s165_s3 }
  0x26   : > { %s152_s7 = scalar_lea.sflag [#allocation6], %s748_s25  ;;  %s563_s8 = scalar_lea.vmem %s166_s3, 128 }
  0x27   : > { %p564_p12 = scmp.ne.s32.totalorder %s166_s3, %s563_s8  ;;  %s665_s30 = smov [#allocation5]  }
  0x28   : > { %s568_s4 = sshll.u32 %s665_s30, 4  ;;  %s569_s4 = int_to_ptr.vmem [resolvable:$false] %s568_s4 }
  0x29   : > { %p566_p6 = pnand %p564_p12, %p524_p3  ;;  %s570_s6 = scalar_lea.vmem %s569_s4, 256 }
  0x2a   : > { %p571_p1 = scmp.lt.s32.totalorder %s166_s3, %s569_s4  ;;  %p572_p2 = scmp.lt.s32.totalorder %s570_s6, %s563_s8 }
  0x2b   : > { %p567_p7 = pneg %p566_p6 }
  0x2c   : > { %p573_p4 = por %p572_p2, %p571_p1 }
  0x2e   : > { %p574_p10 = pnand %p573_p4, %p567_p7 }
  0x30   : > { %577 = shalt.err (!%p574_p10)
}
  0x31   : > { %465 = dma.hbm_to_vmem [thread:$0]  (!%p757_p0), %s163_s28, 128, %s166_s3, %s152_s7  }
  0x32   : > { %174 = sbr.rel (%p775_p5) target bundleno = 274 (0x112), region = 28  ;;  %s793_s25 = sand.u32 (!%p775_p5), 1, %s646_s10  }
  0x33   : > { %s440_s15 = sshll.u32 (!%p775_p5), %s793_s25, 2  ;;  %s177_s16 = scalar_lea.sflag (!%p775_p5), [#allocation3], %s793_s25 }
  0x34   : > { %s180_s19 = scalar_lea.vmem (!%p775_p5), [#allocation2], %s440_s15 }
  0x37   : > { %629 = dma.done.wait (%p730_p8), %s177_s16, 64  }
  0x38   : > { %631 = vsyncadd (%p730_p8), %s177_s16, 4294967232  ;;  %s441_s5 = sshll.u32 %s793_s25, 3  ;;  %s186_s18 = scalar_lea.sflag [#allocation6], %s793_s25 }
  0x39   : > { %s189_s20 = scalar_lea.vmem [#allocation5], %s441_s5 }
  0x3a   : > { %633 = dma.done.wait (%p730_p8), %s186_s18, 128  }
  0x3b   : > { %635 = vsyncadd (%p730_p8), %s186_s18, 4294967168  ;;  %v666_v0 = vmov 0.0   ;;  %v218_v1 = vld [vmem:[%s189_s20] sm:$0xff]  ;;  %vm225_vm0 = vcmask 1043456   ;;  %v217_v3 = vld [vmem:[%s180_s19] sm:$0xf] }
  0x3c   : > { %294 = vmatprep.mubr.f32.mxu0 %v666_v0  ;;  %v220_v2 = vcombine.high %v218_v1, %v218_v1  ;;  %vm221_vm1 = vcmask 31744   ;;  %s452_s26 = sshll.u32 %s654_s12, 7  ;;  %s214_s27 = scalar_lea.vmem [#allocation7], %s441_s5 }
  0x3d   : > { %s323_s28 = sshll.u32 %s214_s27, 4  ;;  %s321_s3 = scalar_lea.hbm %s849_s2, %s452_s26  ;;  %s324_s28 = int_to_ptr.vmem [resolvable:$true] %s323_s28 }
  0x3e   : > { %443 = vmatprep.subr.msk.mxu0 %vm225_vm0, %v220_v2  ;;  %s307_s7 = scalar_lea.sflag [#allocation4], %s793_s25  ;;  %s578_s8 = scalar_lea.vmem %s324_s28, 128 }
  0x3f   : > { %444 = vmatpush1.msk.msra.mxu0 %vm225_vm0, %v218_v1  ;;  %p579_p8 = scmp.ne.s32.totalorder %s324_s28, %s578_s8  ;;  %s667_s30 = smov [#allocation7]  }
  0x40   : > { %445 = vmatmul.mubr.msk.f32.vlgmr.msra.gmra.mxu0 %vm221_vm1, %v217_v3  ;;  %s582_s4 = sshll.u32 %s667_s30, 4  ;;  %s583_s4 = int_to_ptr.vmem [resolvable:$false] %s582_s4 }
  0x41   : > { %p580_p0 = pnand %p579_p8, %p734_p9  ;;  %s584_s12 = scalar_lea.vmem %s583_s4, 256 }
  0x42   : > { %p585_p13 = scmp.lt.s32.totalorder %s324_s28, %s583_s4  ;;  %p586_p5 = scmp.lt.s32.totalorder %s584_s12, %s578_s8 }
  0x43   : > { %p581_p3 = pneg %p580_p0 }
  0x44   : > { %p587_p12 = por %p586_p5, %p585_p13 }
  0x46   : > { %p588_p6 = pnand %p587_p12, %p581_p3 }
 0x100   : > { %v296_v4 = vpop.f32.mrf.mxu0 }
 0x102   : > { %v298_v5 = vpop.f32.mrf.mxu0 }
 0x103   : > { %v303_v6 = vcombine.low %v296_v4, %v298_v5 }
 0x105   : > { %305 = vst [vmem:[%s214_s27] sm:$0xff] %v303_v6 }
 0x106   : > { %591 = shalt.err (!%p588_p6)
}
 0x107   : > { %s592_s6 = scalar_lea.hbm %s321_s3, 128  ;;  %s596_s16 = scalar_lea.hbm %s849_s2, 256 }
 0x108   : > { %p593_p7 = scmp.ne.s32.totalorder %s321_s3, %s592_s6  ;;  %p597_p4 = scmp.lt.s32.totalorder %s321_s3, %s849_s2 }
 0x109   : > { %p598_p10 = scmp.lt.s32.totalorder %s596_s16, %s592_s6 }
 0x10a   : > { %p594_p1 = pnand %p593_p7, %p734_p9 }
 0x10b   : > { %p599_p8 = por %p598_p10, %p597_p4 }
 0x10c   : > { %p595_p2 = pneg %p594_p1 }
 0x10e   : > { %p600_p0 = pnand %p599_p8, %p595_p2 }
 0x110   : > { %603 = shalt.err (!%p600_p0)
}
 0x111   : > { %457 = dma.vmem_to_hbm [thread:$0]  (%p734_p9), %s324_s28, 128, %s321_s3, %s307_s7  }
 0x112 PF: > { %s335_s18 = sand.u32 1, %s642_s9   ;;  %p856_p3 = scmp.ge.s32.totalorder %s662_s14, 2 }
 0x113   : > { %s336_s20 = scalar_lea.sflag [#allocation4], %s335_s18 }
 0x114   : > { %p467_p13 = pnand %p856_p3, %p741_p11 }
 0x116   : > { %p468_p5 = pneg %p467_p13 }
 0x118   : > { %637 = dma.done.wait (%p468_p5), %s336_s20, 128  }
 0x119   : > { %639 = vsyncadd (%p468_p5), %s336_s20, 4294967168  ;;  %s21_s14 = sadd.s32 1, %s662_s14   ;;  %s857_s9 = smov %s646_s10 }
 0x11a   : > { %p18_p12 = scmp.ge.s32.totalorder %s21_s14, 4   ;;  %s858_s10 = smov %s650_s11 }
 0x11b   : > { %s859_s11 = smov %s739_s23  ;;  %s860_s12 = smov %s658_s13 }
 0x11c   : > { %s861_s13 = smov %s863_s17  ;;  %20 = sbr.rel (!%p18_p12) target bundleno = 8 (0x8), region = 86 }
 0x121   :  { %341 = vsyncpa [#allocation3], 1 }
 0x122   :  { %343 = vsyncpa [#allocation3 + $0x1], 1 }
 0x123   :  { %344 = vsyncpa [#allocation6], 1 }
 0x124   :  { %346 = vsyncpa [#allocation6 + $0x1], 1 }
 0x125   :  { %347 = vsyncpa [#allocation4], 1 }
 0x126   :  { %349 = vsyncpa [#allocation4 + $0x1], 1 }

</bundles_post_ra>
